<compile_context>
chip_gen: v6e
topology: v6e:2x2x1
jax: 0.10.0
libtpu: 0.0.40
codegen_flags: <defaults>
</compile_context>

<pallas_src>
import jax
import jax.numpy as jnp
from jax.experimental import pallas as pl
from jax.experimental.pallas import tpu as pltpu

IN_FEATURES = 7
HIDDEN = 4
OUT_FEATURES = 1


def _disc_kernel(x_ref, w1_ref, b1_ref, w2_ref, b2_ref, o_ref):
    """One batch tile.

    x_ref : (7, TB)  VMEM, batch on lanes
    w1_ref: (28,)    SMEM  (row-major flatten of the (4, 7) nn.Linear weight)
    b1_ref: (4,)     SMEM
    w2_ref: (4,)     SMEM  (flatten of the (1, 4) nn.Linear weight)
    b2_ref: (1,)     SMEM
    o_ref : (1, TB)  VMEM
    """
    x = x_ref[...]                                   # (7, TB) f32
    y = None
    for j in range(HIDDEN):                          # fully unrolled: 4 hidden units
        h = x[0:1, :] * w1_ref[j * IN_FEATURES + 0]  # scalar-from-SMEM * lane vector
        for k in range(1, IN_FEATURES):
            h = h + x[k:k + 1, :] * w1_ref[j * IN_FEATURES + k]
        h = jnp.maximum(h + b1_ref[j], 0.0)          # bias add + ReLU (VPU)
        contrib = h * w2_ref[j]
        y = contrib if y is None else y + contrib
    o_ref[...] = (y + b2_ref[0]).astype(o_ref.dtype)


def _round_up(n, m):
    return ((n + m - 1) // m) * m


def discriminator_forward(x, w1, b1, w2, b2, *, batch_tile=2048):
    """WGAN discriminator forward pass.

    x : (B, 7) float32              (PyTorch layout)
    w1: (4, 7), b1: (4,)            (nn.Linear(7, 4): weight is (out, in))
    w2: (1, 4), b2: (1,)            (nn.Linear(4, 1))
    returns (B, 1) float32
    """
    B = x.shape[0]
    xt = x.T.astype(jnp.float32)                     # (7, B): batch on lanes

    # Lane tile must be a multiple of 128; pad the batch up to a tile multiple
    # and slice the padding away on the way out.
    tb = min(batch_tile, _round_up(B, 128))
    b_pad = _round_up(B, tb)
    if b_pad != B:
        xt = jnp.pad(xt, ((0, 0), (0, b_pad - B)))

    grid = (b_pad // tb,)
    smem_spec = pl.BlockSpec(memory_space=pltpu.MemorySpace.SMEM)

    out = pl.pallas_call(
        _disc_kernel,
        out_shape=jax.ShapeDtypeStruct((1, b_pad), jnp.float32),
        grid=grid,
        in_specs=[
            pl.BlockSpec((IN_FEATURES, tb), lambda i: (0, i)),  # streamed batch tile
            smem_spec,  # w1 (flattened)
            smem_spec,  # b1
            smem_spec,  # w2 (flattened)
            smem_spec,  # b2
        ],
        out_specs=pl.BlockSpec((OUT_FEATURES, tb), lambda i: (0, i)),
        compiler_params=pltpu.CompilerParams(
            dimension_semantics=("parallel",)),
    )(
        xt,
        w1.reshape(-1).astype(jnp.float32),
        b1.reshape(-1).astype(jnp.float32),
        w2.reshape(-1).astype(jnp.float32),
        b2.reshape(-1).astype(jnp.float32),
    )

    return out[0, :B].reshape(B, 1)


def init_params(key):
    """Deterministic init mimicking PyTorch nn.Linear default:
    U(-1/sqrt(fan_in), 1/sqrt(fan_in)) for weights and biases.
    Shapes follow PyTorch convention: weight is (out_features, in_features)."""
    k1, k2, k3, k4 = jax.random.split(key, 4)
    bound1 = 1.0 / jnp.sqrt(7.0)
    bound2 = 1.0 / jnp.sqrt(4.0)
    w1 = jax.random.uniform(k1, (HIDDEN, IN_FEATURES), jnp.float32, -bound1, bound1)
    b1 = jax.random.uniform(k2, (HIDDEN,), jnp.float32, -bound1, bound1)
    w2 = jax.random.uniform(k3, (OUT_FEATURES, HIDDEN), jnp.float32, -bound2, bound2)
    b2 = jax.random.uniform(k4, (OUT_FEATURES,), jnp.float32, -bound2, bound2)
    return w1, b1, w2, b2


def reference_forward(x, w1, b1, w2, b2):
    h = jnp.maximum(x @ w1.T + b1, 0.0)
    return h @ w2.T + b2


if __name__ == "__main__":
    key = jax.random.PRNGKey(0)
    kx1, kx2, kp = jax.random.split(key, 3)
    w1, b1, w2, b2 = init_params(kp)

    # Small batch (single grid tile, batch padded up to 128 lanes).
    x_small = jax.random.normal(kx1, (8, IN_FEATURES), jnp.float32)
    out_small = jax.block_until_ready(
        discriminator_forward(x_small, w1, b1, w2, b2))
    ref_small = reference_forward(x_small, w1, b1, w2, b2)
    assert out_small.shape == (8, 1)
    assert jnp.allclose(out_small, ref_small, atol=1e-5, rtol=1e-5), \
        "mismatch vs reference (small batch)"

    # Ragged batch: multiple grid tiles + tail padding (333 -> 384 lanes, 3 tiles).
    x_big = jax.random.normal(kx2, (333, IN_FEATURES), jnp.float32)
    out_big = jax.block_until_ready(
        discriminator_forward(x_big, w1, b1, w2, b2, batch_tile=128))
    ref_big = reference_forward(x_big, w1, b1, w2, b2)
    assert out_big.shape == (333, 1)
    assert jnp.allclose(out_big, ref_big, atol=1e-5, rtol=1e-5), \
        "mismatch vs reference (tiled batch)"

    print("KERNEL_OK")
</pallas_src>

<mosaic_0001>
module attributes {stable_mosaic.version = 11 : i64} {
  func.func @_disc_kernel(%arg0: i32, %arg1: memref<7x128xf32, #tpu.memory_space<vmem>>, %arg2: memref<28xf32, #tpu.memory_space<smem>>, %arg3: memref<4xf32, #tpu.memory_space<smem>>, %arg4: memref<4xf32, #tpu.memory_space<smem>>, %arg5: memref<1xf32, #tpu.memory_space<smem>>, %arg6: memref<1x128xf32, #tpu.memory_space<vmem>>) attributes {dimension_semantics = [#tpu.dimension_semantics<parallel>], iteration_bounds = array<i64: 1>, scalar_prefetch = 0 : i64, scratch_operands = 0 : i64, tpu.core_type = #tpu.core_type<tc>, window_params = [{transform_indices = @transform_0, window_bounds = array<i64: 7, 128>}, {transform_indices = @transform_1, window_bounds = array<i64: 28>}, {transform_indices = @transform_2, window_bounds = array<i64: 4>}, {transform_indices = @transform_3, window_bounds = array<i64: 4>}, {transform_indices = @transform_4, window_bounds = array<i64: 1>}, {transform_indices = @transform_5, window_bounds = array<i64: 1, 128>}]} {
    %c0 = arith.constant 0 : index
    %c0_0 = arith.constant 0 : index
    %0 = vector.load %arg1[%c0, %c0_0] : memref<7x128xf32, #tpu.memory_space<vmem>>, vector<7x128xf32>
    %1 = vector.extract_strided_slice %0 {offsets = [0, 0], sizes = [1, 128], strides = [1, 1]} : vector<7x128xf32> to vector<1x128xf32>
    %c0_1 = arith.constant 0 : index
    %2 = memref.load %arg2[%c0_1] : memref<28xf32, #tpu.memory_space<smem>>
    %3 = vector.broadcast %2 : f32 to vector<1x128xf32>
    %4 = arith.mulf %1, %3 : vector<1x128xf32>
    %5 = vector.extract_strided_slice %0 {offsets = [1, 0], sizes = [1, 128], strides = [1, 1]} : vector<7x128xf32> to vector<1x128xf32>
    %c1 = arith.constant 1 : index
    %6 = memref.load %arg2[%c1] : memref<28xf32, #tpu.memory_space<smem>>
    %7 = vector.broadcast %6 : f32 to vector<1x128xf32>
    %8 = arith.mulf %5, %7 : vector<1x128xf32>
    %9 = arith.addf %4, %8 : vector<1x128xf32>
    %10 = vector.extract_strided_slice %0 {offsets = [2, 0], sizes = [1, 128], strides = [1, 1]} : vector<7x128xf32> to vector<1x128xf32>
    %c2 = arith.constant 2 : index
    %11 = memref.load %arg2[%c2] : memref<28xf32, #tpu.memory_space<smem>>
    %12 = vector.broadcast %11 : f32 to vector<1x128xf32>
    %13 = arith.mulf %10, %12 : vector<1x128xf32>
    %14 = arith.addf %9, %13 : vector<1x128xf32>
    %15 = vector.extract_strided_slice %0 {offsets = [3, 0], sizes = [1, 128], strides = [1, 1]} : vector<7x128xf32> to vector<1x128xf32>
    %c3 = arith.constant 3 : index
    %16 = memref.load %arg2[%c3] : memref<28xf32, #tpu.memory_space<smem>>
    %17 = vector.broadcast %16 : f32 to vector<1x128xf32>
    %18 = arith.mulf %15, %17 : vector<1x128xf32>
    %19 = arith.addf %14, %18 : vector<1x128xf32>
    %20 = vector.extract_strided_slice %0 {offsets = [4, 0], sizes = [1, 128], strides = [1, 1]} : vector<7x128xf32> to vector<1x128xf32>
    %c4 = arith.constant 4 : index
    %21 = memref.load %arg2[%c4] : memref<28xf32, #tpu.memory_space<smem>>
    %22 = vector.broadcast %21 : f32 to vector<1x128xf32>
    %23 = arith.mulf %20, %22 : vector<1x128xf32>
    %24 = arith.addf %19, %23 : vector<1x128xf32>
    %25 = vector.extract_strided_slice %0 {offsets = [5, 0], sizes = [1, 128], strides = [1, 1]} : vector<7x128xf32> to vector<1x128xf32>
    %c5 = arith.constant 5 : index
    %26 = memref.load %arg2[%c5] : memref<28xf32, #tpu.memory_space<smem>>
    %27 = vector.broadcast %26 : f32 to vector<1x128xf32>
    %28 = arith.mulf %25, %27 : vector<1x128xf32>
    %29 = arith.addf %24, %28 : vector<1x128xf32>
    %30 = vector.extract_strided_slice %0 {offsets = [6, 0], sizes = [1, 128], strides = [1, 1]} : vector<7x128xf32> to vector<1x128xf32>
    %c6 = arith.constant 6 : index
    %31 = memref.load %arg2[%c6] : memref<28xf32, #tpu.memory_space<smem>>
    %32 = vector.broadcast %31 : f32 to vector<1x128xf32>
    %33 = arith.mulf %30, %32 : vector<1x128xf32>
    %34 = arith.addf %29, %33 : vector<1x128xf32>
    %c0_2 = arith.constant 0 : index
    %35 = memref.load %arg3[%c0_2] : memref<4xf32, #tpu.memory_space<smem>>
    %36 = vector.broadcast %35 : f32 to vector<1x128xf32>
    %37 = arith.addf %34, %36 : vector<1x128xf32>
    %cst = arith.constant 0.000000e+00 : f32
    %38 = vector.broadcast %cst : f32 to vector<1x128xf32>
    %39 = arith.maximumf %37, %38 : vector<1x128xf32>
    %c0_3 = arith.constant 0 : index
    %40 = memref.load %arg4[%c0_3] : memref<4xf32, #tpu.memory_space<smem>>
    %41 = vector.broadcast %40 : f32 to vector<1x128xf32>
    %42 = arith.mulf %39, %41 : vector<1x128xf32>
    %43 = vector.extract_strided_slice %0 {offsets = [0, 0], sizes = [1, 128], strides = [1, 1]} : vector<7x128xf32> to vector<1x128xf32>
    %c7 = arith.constant 7 : index
    %44 = memref.load %arg2[%c7] : memref<28xf32, #tpu.memory_space<smem>>
    %45 = vector.broadcast %44 : f32 to vector<1x128xf32>
    %46 = arith.mulf %43, %45 : vector<1x128xf32>
    %47 = vector.extract_strided_slice %0 {offsets = [1, 0], sizes = [1, 128], strides = [1, 1]} : vector<7x128xf32> to vector<1x128xf32>
    %c8 = arith.constant 8 : index
    %48 = memref.load %arg2[%c8] : memref<28xf32, #tpu.memory_space<smem>>
    %49 = vector.broadcast %48 : f32 to vector<1x128xf32>
    %50 = arith.mulf %47, %49 : vector<1x128xf32>
    %51 = arith.addf %46, %50 : vector<1x128xf32>
    %52 = vector.extract_strided_slice %0 {offsets = [2, 0], sizes = [1, 128], strides = [1, 1]} : vector<7x128xf32> to vector<1x128xf32>
    %c9 = arith.constant 9 : index
    %53 = memref.load %arg2[%c9] : memref<28xf32, #tpu.memory_space<smem>>
    %54 = vector.broadcast %53 : f32 to vector<1x128xf32>
    %55 = arith.mulf %52, %54 : vector<1x128xf32>
    %56 = arith.addf %51, %55 : vector<1x128xf32>
    %57 = vector.extract_strided_slice %0 {offsets = [3, 0], sizes = [1, 128], strides = [1, 1]} : vector<7x128xf32> to vector<1x128xf32>
    %c10 = arith.constant 10 : index
    %58 = memref.load %arg2[%c10] : memref<28xf32, #tpu.memory_space<smem>>
    %59 = vector.broadcast %58 : f32 to vector<1x128xf32>
    %60 = arith.mulf %57, %59 : vector<1x128xf32>
    %61 = arith.addf %56, %60 : vector<1x128xf32>
    %62 = vector.extract_strided_slice %0 {offsets = [4, 0], sizes = [1, 128], strides = [1, 1]} : vector<7x128xf32> to vector<1x128xf32>
    %c11 = arith.constant 11 : index
    %63 = memref.load %arg2[%c11] : memref<28xf32, #tpu.memory_space<smem>>
    %64 = vector.broadcast %63 : f32 to vector<1x128xf32>
    %65 = arith.mulf %62, %64 : vector<1x128xf32>
    %66 = arith.addf %61, %65 : vector<1x128xf32>
    %67 = vector.extract_strided_slice %0 {offsets = [5, 0], sizes = [1, 128], strides = [1, 1]} : vector<7x128xf32> to vector<1x128xf32>
    %c12 = arith.constant 12 : index
    %68 = memref.load %arg2[%c12] : memref<28xf32, #tpu.memory_space<smem>>
    %69 = vector.broadcast %68 : f32 to vector<1x128xf32>
    %70 = arith.mulf %67, %69 : vector<1x128xf32>
    %71 = arith.addf %66, %70 : vector<1x128xf32>
    %72 = vector.extract_strided_slice %0 {offsets = [6, 0], sizes = [1, 128], strides = [1, 1]} : vector<7x128xf32> to vector<1x128xf32>
    %c13 = arith.constant 13 : index
    %73 = memref.load %arg2[%c13] : memref<28xf32, #tpu.memory_space<smem>>
    %74 = vector.broadcast %73 : f32 to vector<1x128xf32>
    %75 = arith.mulf %72, %74 : vector<1x128xf32>
    %76 = arith.addf %71, %75 : vector<1x128xf32>
    %c1_4 = arith.constant 1 : index
    %77 = memref.load %arg3[%c1_4] : memref<4xf32, #tpu.memory_space<smem>>
    %78 = vector.broadcast %77 : f32 to vector<1x128xf32>
    %79 = arith.addf %76, %78 : vector<1x128xf32>
    %cst_5 = arith.constant 0.000000e+00 : f32
    %80 = vector.broadcast %cst_5 : f32 to vector<1x128xf32>
    %81 = arith.maximumf %79, %80 : vector<1x128xf32>
    %c1_6 = arith.constant 1 : index
    %82 = memref.load %arg4[%c1_6] : memref<4xf32, #tpu.memory_space<smem>>
    %83 = vector.broadcast %82 : f32 to vector<1x128xf32>
    %84 = arith.mulf %81, %83 : vector<1x128xf32>
    %85 = arith.addf %42, %84 : vector<1x128xf32>
    %86 = vector.extract_strided_slice %0 {offsets = [0, 0], sizes = [1, 128], strides = [1, 1]} : vector<7x128xf32> to vector<1x128xf32>
    %c14 = arith.constant 14 : index
    %87 = memref.load %arg2[%c14] : memref<28xf32, #tpu.memory_space<smem>>
    %88 = vector.broadcast %87 : f32 to vector<1x128xf32>
    %89 = arith.mulf %86, %88 : vector<1x128xf32>
    %90 = vector.extract_strided_slice %0 {offsets = [1, 0], sizes = [1, 128], strides = [1, 1]} : vector<7x128xf32> to vector<1x128xf32>
    %c15 = arith.constant 15 : index
    %91 = memref.load %arg2[%c15] : memref<28xf32, #tpu.memory_space<smem>>
    %92 = vector.broadcast %91 : f32 to vector<1x128xf32>
    %93 = arith.mulf %90, %92 : vector<1x128xf32>
    %94 = arith.addf %89, %93 : vector<1x128xf32>
    %95 = vector.extract_strided_slice %0 {offsets = [2, 0], sizes = [1, 128], strides = [1, 1]} : vector<7x128xf32> to vector<1x128xf32>
    %c16 = arith.constant 16 : index
    %96 = memref.load %arg2[%c16] : memref<28xf32, #tpu.memory_space<smem>>
    %97 = vector.broadcast %96 : f32 to vector<1x128xf32>
    %98 = arith.mulf %95, %97 : vector<1x128xf32>
    %99 = arith.addf %94, %98 : vector<1x128xf32>
    %100 = vector.extract_strided_slice %0 {offsets = [3, 0], sizes = [1, 128], strides = [1, 1]} : vector<7x128xf32> to vector<1x128xf32>
    %c17 = arith.constant 17 : index
    %101 = memref.load %arg2[%c17] : memref<28xf32, #tpu.memory_space<smem>>
    %102 = vector.broadcast %101 : f32 to vector<1x128xf32>
    %103 = arith.mulf %100, %102 : vector<1x128xf32>
    %104 = arith.addf %99, %103 : vector<1x128xf32>
    %105 = vector.extract_strided_slice %0 {offsets = [4, 0], sizes = [1, 128], strides = [1, 1]} : vector<7x128xf32> to vector<1x128xf32>
    %c18 = arith.constant 18 : index
    %106 = memref.load %arg2[%c18] : memref<28xf32, #tpu.memory_space<smem>>
    %107 = vector.broadcast %106 : f32 to vector<1x128xf32>
    %108 = arith.mulf %105, %107 : vector<1x128xf32>
    %109 = arith.addf %104, %108 : vector<1x128xf32>
    %110 = vector.extract_strided_slice %0 {offsets = [5, 0], sizes = [1, 128], strides = [1, 1]} : vector<7x128xf32> to vector<1x128xf32>
    %c19 = arith.constant 19 : index
    %111 = memref.load %arg2[%c19] : memref<28xf32, #tpu.memory_space<smem>>
    %112 = vector.broadcast %111 : f32 to vector<1x128xf32>
    %113 = arith.mulf %110, %112 : vector<1x128xf32>
    %114 = arith.addf %109, %113 : vector<1x128xf32>
    %115 = vector.extract_strided_slice %0 {offsets = [6, 0], sizes = [1, 128], strides = [1, 1]} : vector<7x128xf32> to vector<1x128xf32>
    %c20 = arith.constant 20 : index
    %116 = memref.load %arg2[%c20] : memref<28xf32, #tpu.memory_space<smem>>
    %117 = vector.broadcast %116 : f32 to vector<1x128xf32>
    %118 = arith.mulf %115, %117 : vector<1x128xf32>
    %119 = arith.addf %114, %118 : vector<1x128xf32>
    %c2_7 = arith.constant 2 : index
    %120 = memref.load %arg3[%c2_7] : memref<4xf32, #tpu.memory_space<smem>>
    %121 = vector.broadcast %120 : f32 to vector<1x128xf32>
    %122 = arith.addf %119, %121 : vector<1x128xf32>
    %cst_8 = arith.constant 0.000000e+00 : f32
    %123 = vector.broadcast %cst_8 : f32 to vector<1x128xf32>
    %124 = arith.maximumf %122, %123 : vector<1x128xf32>
    %c2_9 = arith.constant 2 : index
    %125 = memref.load %arg4[%c2_9] : memref<4xf32, #tpu.memory_space<smem>>
    %126 = vector.broadcast %125 : f32 to vector<1x128xf32>
    %127 = arith.mulf %124, %126 : vector<1x128xf32>
    %128 = arith.addf %85, %127 : vector<1x128xf32>
    %129 = vector.extract_strided_slice %0 {offsets = [0, 0], sizes = [1, 128], strides = [1, 1]} : vector<7x128xf32> to vector<1x128xf32>
    %c21 = arith.constant 21 : index
    %130 = memref.load %arg2[%c21] : memref<28xf32, #tpu.memory_space<smem>>
    %131 = vector.broadcast %130 : f32 to vector<1x128xf32>
    %132 = arith.mulf %129, %131 : vector<1x128xf32>
    %133 = vector.extract_strided_slice %0 {offsets = [1, 0], sizes = [1, 128], strides = [1, 1]} : vector<7x128xf32> to vector<1x128xf32>
    %c22 = arith.constant 22 : index
    %134 = memref.load %arg2[%c22] : memref<28xf32, #tpu.memory_space<smem>>
    %135 = vector.broadcast %134 : f32 to vector<1x128xf32>
    %136 = arith.mulf %133, %135 : vector<1x128xf32>
    %137 = arith.addf %132, %136 : vector<1x128xf32>
    %138 = vector.extract_strided_slice %0 {offsets = [2, 0], sizes = [1, 128], strides = [1, 1]} : vector<7x128xf32> to vector<1x128xf32>
    %c23 = arith.constant 23 : index
    %139 = memref.load %arg2[%c23] : memref<28xf32, #tpu.memory_space<smem>>
    %140 = vector.broadcast %139 : f32 to vector<1x128xf32>
    %141 = arith.mulf %138, %140 : vector<1x128xf32>
    %142 = arith.addf %137, %141 : vector<1x128xf32>
    %143 = vector.extract_strided_slice %0 {offsets = [3, 0], sizes = [1, 128], strides = [1, 1]} : vector<7x128xf32> to vector<1x128xf32>
    %c24 = arith.constant 24 : index
    %144 = memref.load %arg2[%c24] : memref<28xf32, #tpu.memory_space<smem>>
    %145 = vector.broadcast %144 : f32 to vector<1x128xf32>
    %146 = arith.mulf %143, %145 : vector<1x128xf32>
    %147 = arith.addf %142, %146 : vector<1x128xf32>
    %148 = vector.extract_strided_slice %0 {offsets = [4, 0], sizes = [1, 128], strides = [1, 1]} : vector<7x128xf32> to vector<1x128xf32>
    %c25 = arith.constant 25 : index
    %149 = memref.load %arg2[%c25] : memref<28xf32, #tpu.memory_space<smem>>
    %150 = vector.broadcast %149 : f32 to vector<1x128xf32>
    %151 = arith.mulf %148, %150 : vector<1x128xf32>
    %152 = arith.addf %147, %151 : vector<1x128xf32>
    %153 = vector.extract_strided_slice %0 {offsets = [5, 0], sizes = [1, 128], strides = [1, 1]} : vector<7x128xf32> to vector<1x128xf32>
    %c26 = arith.constant 26 : index
    %154 = memref.load %arg2[%c26] : memref<28xf32, #tpu.memory_space<smem>>
    %155 = vector.broadcast %154 : f32 to vector<1x128xf32>
    %156 = arith.mulf %153, %155 : vector<1x128xf32>
    %157 = arith.addf %152, %156 : vector<1x128xf32>
    %158 = vector.extract_strided_slice %0 {offsets = [6, 0], sizes = [1, 128], strides = [1, 1]} : vector<7x128xf32> to vector<1x128xf32>
    %c27 = arith.constant 27 : index
    %159 = memref.load %arg2[%c27] : memref<28xf32, #tpu.memory_space<smem>>
    %160 = vector.broadcast %159 : f32 to vector<1x128xf32>
    %161 = arith.mulf %158, %160 : vector<1x128xf32>
    %162 = arith.addf %157, %161 : vector<1x128xf32>
    %c3_10 = arith.constant 3 : index
    %163 = memref.load %arg3[%c3_10] : memref<4xf32, #tpu.memory_space<smem>>
    %164 = vector.broadcast %163 : f32 to vector<1x128xf32>
    %165 = arith.addf %162, %164 : vector<1x128xf32>
    %cst_11 = arith.constant 0.000000e+00 : f32
    %166 = vector.broadcast %cst_11 : f32 to vector<1x128xf32>
    %167 = arith.maximumf %165, %166 : vector<1x128xf32>
    %c3_12 = arith.constant 3 : index
    %168 = memref.load %arg4[%c3_12] : memref<4xf32, #tpu.memory_space<smem>>
    %169 = vector.broadcast %168 : f32 to vector<1x128xf32>
    %170 = arith.mulf %167, %169 : vector<1x128xf32>
    %171 = arith.addf %128, %170 : vector<1x128xf32>
    %c0_13 = arith.constant 0 : index
    %172 = memref.load %arg5[%c0_13] : memref<1xf32, #tpu.memory_space<smem>>
    %173 = vector.broadcast %172 : f32 to vector<1x128xf32>
    %174 = arith.addf %171, %173 : vector<1x128xf32>
    %c0_14 = arith.constant 0 : index
    %c0_15 = arith.constant 0 : index
    %175 = vector.load %arg6[%c0_14, %c0_15] : memref<1x128xf32, #tpu.memory_space<vmem>>, vector<1x128xf32>
    tpu.vector_store %arg6[%c0_14, %c0_15], %174 {strides = array<i32>} : memref<1x128xf32, #tpu.memory_space<vmem>>, vector<1x128xf32>,
    return
  }
  func.func @transform_0(%arg0: i32) -> (i32, i32) {
    %c0_i32 = arith.constant 0 : i32
    %c0_i32_0 = arith.constant 0 : i32
    return %c0_i32, %arg0 : i32, i32
  }
  func.func @transform_1(%arg0: i32) -> i32 {
    %c0_i32 = arith.constant 0 : i32
    %c0_i32_0 = arith.constant 0 : i32
    return %c0_i32 : i32
  }
  func.func @transform_2(%arg0: i32) -> i32 {
    %c0_i32 = arith.constant 0 : i32
    %c0_i32_0 = arith.constant 0 : i32
    return %c0_i32 : i32
  }
  func.func @transform_3(%arg0: i32) -> i32 {
    %c0_i32 = arith.constant 0 : i32
    %c0_i32_0 = arith.constant 0 : i32
    return %c0_i32 : i32
  }
  func.func @transform_4(%arg0: i32) -> i32 {
    %c0_i32 = arith.constant 0 : i32
    %c0_i32_0 = arith.constant 0 : i32
    return %c0_i32 : i32
  }
  func.func @transform_5(%arg0: i32) -> (i32, i32) {
    %c0_i32 = arith.constant 0 : i32
    %c0_i32_0 = arith.constant 0 : i32
    return %c0_i32, %arg0 : i32, i32
  }
}

</mosaic_0001>

<bundles_post_ra>
// kernel: tpu_custom_call.1
= control target key start
LH: loop header
LB: loop body
LE: loop exit
PB: predicated region body
PF: predicated region fallthrough
CT: control target
= control target key end

     0   :  { %11 = vsyncpa [#allocation4], 0  ;;  %s541_s0 = inlined_call_operand.hbm [shape: f32[7,128], index: 0, kind: input, shape index: {}]   ;;  %s542_s1 = inlined_call_operand.vmem [shape: f32[28], index: 1, kind: input, shape index: {}]   ;;  %s543_s2 = inlined_call_operand.vmem [shape: f32[4], index: 2, kind: input, shape index: {}]   ;;  %s544_s3 = inlined_call_operand.vmem [shape: f32[4], index: 3, kind: input, shape index: {}]   ;;  %s545_s4 = inlined_call_operand.<no memory space> [shape: f32[1], index: 4, kind: input, shape index: {}]   ;;  %s546_s5 = inlined_call_operand.hbm [shape: f32[1,128], index: 5, kind: output, shape index: {}]  }
   0x1   :  { %12 = vsyncpa [#allocation6], 0 }
   0x2   :  { %13 = vsyncpa [#allocation9], 0  ;;  %s41_s20 = sshll.u32 %s543_s2, 4  ;;  %s42_s20 = int_to_ptr.vmem [resolvable:$true] %s41_s20 }
   0x3   :  { %14 = vsyncpa [#allocation5], 0  ;;  %s341_s21 = scalar_lea.vmem %s42_s20, 16  ;;  %p346_p1 = scmp.lt.s32.totalorder %s42_s20, %s42_s20 }
   0x4   :  { %p342_p0 = scmp.ne.s32.totalorder %s42_s20, %s341_s21  ;;  %p347_p2 = scmp.lt.s32.totalorder %s341_s21, %s341_s21 }
   0x6   :  { %p348_p3 = por %p347_p2, %p346_p1 }
   0x8   :  { %p349_p4 = pnand %p348_p3, %p342_p0 }
   0xa   :  { %352 = shalt.err (!%p349_p4)
}
   0xb   :  { %s425_s22 = smov [#allocation8]   ;;  %s426_s23 = smov [#allocation3]  }
   0xc   :  { %44 = dma.vmem_to_smem %s42_s20, 16, %s425_s22, [#allocation9]  }
   0xd   :  { %s21_s24 = sshll.u32 %s426_s23, 4  ;;  %s31_s27 = sshll.u32 %s542_s1, 4  ;;  %s22_s24 = int_to_ptr.vmem [resolvable:$true] %s21_s24  ;;  %s32_s27 = int_to_ptr.vmem [resolvable:$true] %s31_s27 }
   0xe   :  { %s361_s2 = scalar_lea.vmem %s22_s24, 128  ;;  %p366_p6 = scmp.lt.s32.totalorder %s22_s24, %s22_s24 }
   0xf   :  { %p362_p5 = scmp.ne.s32.totalorder %s22_s24, %s361_s2  ;;  %p367_p7 = scmp.lt.s32.totalorder %s361_s2, %s361_s2 }
  0x11   :  { %p368_p8 = por %p367_p7, %p366_p6 }
  0x13   :  { %p369_p9 = pnand %p368_p8, %p362_p5 }
  0x15   :  { %372 = shalt.err (!%p369_p9)
}
  0x16   :  { %24 = dma.hbm_to_vmem [thread:$0]  %s541_s0, 128, %s22_s24, [#allocation4]  }
  0x17   :  { %s51_s7 = sshll.u32 %s544_s3, 4  ;;  %s373_s8 = scalar_lea.vmem %s32_s27, 16  ;;  %s52_s7 = int_to_ptr.vmem [resolvable:$true] %s51_s7 }
  0x18   :  { %p374_p10 = scmp.ne.s32.totalorder %s32_s27, %s373_s8  ;;  %p378_p11 = scmp.lt.s32.totalorder %s32_s27, %s32_s27 }
  0x19   :  { %p379_p12 = scmp.lt.s32.totalorder %s373_s8, %s373_s8 }
  0x1b   :  { %p380_p13 = por %p379_p12, %p378_p11 }
  0x1d   :  { %p381_p0 = pnand %p380_p13, %p374_p10 }
  0x1f   :  { %384 = shalt.err (!%p381_p0)
}
  0x20   :  { %s427_s1 = smov [#allocation7]   ;;  %s385_s9 = scalar_lea.vmem %s52_s7, 16 }
  0x21   :  { %34 = dma.vmem_to_smem %s32_s27, 16, %s427_s1, [#allocation6]  }
  0x22   :  { %p386_p1 = scmp.ne.s32.totalorder %s52_s7, %s385_s9  ;;  %p390_p2 = scmp.lt.s32.totalorder %s52_s7, %s52_s7 }
  0x23   :  { %p391_p3 = scmp.lt.s32.totalorder %s385_s9, %s385_s9 }
  0x25   :  { %p392_p4 = por %p391_p3, %p390_p2 }
  0x27   :  { %p393_p5 = pnand %p392_p4, %p386_p1 }
  0x29   :  { %396 = shalt.err (!%p393_p5)
}
  0x2a   :  { %s428_s0 = smov [#allocation10]  }
  0x2b   :  { %54 = dma.vmem_to_smem %s52_s7, 16, %s428_s0, [#allocation9]  }
  0x2c   :  { %417 = dma.done.wait [#allocation4], 128  }
  0x2d   :  { %418 = vsyncadd [#allocation4], 4294967168 }
  0x2e   :  { %419 = dma.done.wait [#allocation6], 16  }
  0x2f   :  { %420 = vsyncadd [#allocation6], 4294967280 }
  0x30   :  { %421 = dma.done.wait [#allocation9], 32  }
  0x31   :  { %422 = vsyncadd [#allocation9], 4294967264 }
  0x32   :  { %69 = sfence }
  0x33   :  { %s71_s3 = sld [smem:[#allocation7]]  ;;  %v472_v0 = vld [vmem:[#allocation3] sm:$0x7f] }
  0x34   :  { %s303_s10 = sld [smem:[#allocation7 + $0x1]] }
  0x35   :  { %s304_s11 = sld [smem:[#allocation7 + $0x2]] }
  0x36   :  { %s305_s12 = sld [smem:[#allocation7 + $0x3]] }
  0x37   :  { %s306_s13 = sld [smem:[#allocation7 + $0x4]] }
  0x38   :  { %s307_s14 = sld [smem:[#allocation7 + $0x5]] }
  0x39   :  { %v72_v1 = vstv %s71_s3  ;;  %s476_s15 = sld [smem:[#allocation7 + $0x6]] }
  0x3a   :  { %v75_v2 = vstv %s303_s10  ;;  %v73_v3 = vmul.f32 %v72_v1, %v472_v0  ;;  %s309_s16 = sld [smem:[#allocation7 + $0x7]] }
  0x3b   :  { %v76_v4 = vmul.f32 %v75_v2, %v472_v0  ;;  %v82_v5 = vstv %s304_s11  ;;  %s310_s17 = sld [smem:[#allocation7 + $0x8]] }
  0x3c   :  { %v83_v6 = vmul.f32 %v82_v5, %v472_v0  ;;  %v89_v7 = vstv %s305_s12  ;;  %s311_s18 = sld [smem:[#allocation7 + $0x9]] }
  0x3d   :  { %v78_v8 = vrot.slane %v76_v4, 1  ;;  %v90_v10 = vmul.f32 %v89_v7, %v472_v0  ;;  %v96_v11 = vstv %s306_s13  ;;  %s312_s19 = sld [smem:[#allocation7 + $0xa]] }
  0x3e   :  { %v85_v9 = vrot.slane %v83_v6, 2  ;;  %s313_s20 = sld [smem:[#allocation7 + $0xb]]  ;;  %v97_v13 = vmul.f32 %v96_v11, %v472_v0  ;;  %v103_v14 = vstv %s307_s14 }
  0x3f   :  { %v80_v12 = vadd.f32 %v78_v8, %v73_v3  ;;  %s314_s21 = sld [smem:[#allocation7 + $0xc]]  ;;  %v92_v16 = vrot.slane %v90_v10, 3  ;;  %v104_v19 = vmul.f32 %v103_v14, %v472_v0  ;;  %v110_v24 = vstv %s476_s15 }
  0x40   :  { %v124_v17 = vstv %s309_s16  ;;  %s481_s22 = sld [smem:[#allocation7 + $0xd]]  ;;  %v99_v23 = vrot.slane %v97_v13, 4  ;;  %v111_v38 = vmul.f32 %v110_v24, %v472_v0 }
  0x41   :  { %v87_v15 = vadd.f32 %v85_v9, %v80_v12  ;;  %s483_s23 = sld [smem:[#allocation8]]  ;;  %v127_v18 = vstv %s310_s17  ;;  %v125_v20 = vmul.f32 %v124_v17, %v472_v0  ;;  %v106_v40 = vrot.slane %v104_v19, 5 }
  0x42   :  { %s486_s24 = sld [smem:[#allocation10]]  ;;  %v128_v21 = vmul.f32 %v127_v18, %v472_v0  ;;  %v134_v22 = vstv %s311_s18  ;;  %v113_v48 = vrot.slane %v111_v38, 6  ;;  %s429_s18 = smov [#allocation11]  }
  0x43   :  { %v135_v25 = vmul.f32 %v134_v22, %v472_v0  ;;  %v141_v26 = vstv %s312_s19  ;;  %s318_s25 = sld [smem:[#allocation7 + $0xe]]  ;;  %v94_v27 = vadd.f32 %v92_v16, %v87_v15  ;;  %s292_s19 = sshll.u32 %s429_s18, 4  ;;  %s293_s19 = int_to_ptr.vmem [resolvable:$true] %s292_s19 }
  0x44   :  { %v130_v28 = vrot.slane %v128_v21, 1  ;;  %v142_v29 = vmul.f32 %v141_v26, %v472_v0  ;;  %v148_v30 = vstv %s313_s20  ;;  %s319_s26 = sld [smem:[#allocation7 + $0xf]]  ;;  %s397_s20 = scalar_lea.vmem %s293_s19, 16 }
  0x45   :  { %v137_v31 = vrot.slane %v135_v25, 2  ;;  %v149_v32 = vmul.f32 %v148_v30, %v472_v0  ;;  %v155_v33 = vstv %s314_s21  ;;  %s320_s27 = sld [smem:[#allocation7 + $0x10]]  ;;  %v101_v39 = vadd.f32 %v99_v23, %v94_v27  ;;  %p398_p6 = scmp.ne.s32.totalorder %s293_s19, %s397_s20 }
  0x46   :  { %v132_v34 = vadd.f32 %v130_v28, %v125_v20  ;;  %v144_v35 = vrot.slane %v142_v29, 3  ;;  %v156_v36 = vmul.f32 %v155_v33, %v472_v0  ;;  %v162_v37 = vstv %s481_s22  ;;  %s321_s2 = sld [smem:[#allocation7 + $0x11]]  ;;  %s401_s21 = scalar_lea.vmem %s293_s19, 32 }
  0x47   :  { %s322_s28 = sld [smem:[#allocation7 + $0x12]]  ;;  %v151_v42 = vrot.slane %v149_v32, 4  ;;  %v163_v43 = vmul.f32 %v162_v37, %v472_v0  ;;  %v108_v52 = vadd.f32 %v106_v40, %v101_v39  ;;  %v117_v6 = vstv %s483_s23  ;;  %p402_p7 = scmp.lt.s32.totalorder %s293_s19, %s293_s19 }
  0x48   :  { %v139_v41 = vadd.f32 %v137_v31, %v132_v34  ;;  %s323_s29 = sld [smem:[#allocation7 + $0x13]]  ;;  %v158_v46 = vrot.slane %v156_v36, 5  ;;  %v121_v37 = vstv %s486_s24  ;;  %p403_p8 = scmp.lt.s32.totalorder %s401_s21, %s397_s20 }
  0x49   :  { %v177_v44 = vstv %s318_s25  ;;  %s498_s30 = sld [smem:[#allocation7 + $0x14]]  ;;  %v165_v56 = vrot.slane %v163_v43, 6  ;;  %v115_v5 = vadd.f32 %v113_v48, %v108_v52 }
  0x4a   :  { %v146_v45 = vadd.f32 %v144_v35, %v139_v41  ;;  %s500_s6 = sld [smem:[#allocation8 + $0x1]]  ;;  %v180_v47 = vstv %s319_s26  ;;  %v178_v49 = vmul.f32 %v177_v44, %v472_v0  ;;  %p404_p9 = por %p403_p8, %p402_p7 }
  0x4b   :  { %v181_v50 = vmul.f32 %v180_v47, %v472_v0  ;;  %v187_v51 = vstv %s320_s27  ;;  %s504_s7 = sld [smem:[#allocation8 + $0x2]]  ;;  %v118_v16 = vadd.f32 %v117_v6, %v115_v5 }
  0x4c   :  { %v153_v53 = vadd.f32 %v151_v42, %v146_v45  ;;  %v188_v54 = vmul.f32 %v187_v51, %v472_v0  ;;  %v194_v55 = vstv %s321_s2  ;;  %s507_s8 = sld [smem:[#allocation7 + $0x15]]  ;;  %p405_p10 = pnand %p404_p9, %p398_p6 }
  0x4d   :  { %v183_v57 = vrot.slane %v181_v50, 1  ;;  %v195_v58 = vmul.f32 %v194_v55, %v472_v0  ;;  %v201_v59 = vstv %s322_s28  ;;  %s328_s1 = sld [smem:[#allocation7 + $0x16]]  ;;  %v119_v36 = vmax.f32 %v118_v16, 0.0 }
  0x4e   :  { %v160_v60 = vadd.f32 %v158_v46, %v153_v53  ;;  %v190_v61 = vrot.slane %v188_v54, 2  ;;  %v202_v62 = vmul.f32 %v201_v59, %v472_v0  ;;  %v208_v63 = vstv %s323_s29  ;;  %s329_s9 = sld [smem:[#allocation7 + $0x17]] }
  0x4f   :  { %v185_v1 = vadd.f32 %v183_v57, %v178_v49  ;;  %v197_v2 = vrot.slane %v195_v58, 3  ;;  %v209_v3 = vmul.f32 %v208_v63, %v472_v0  ;;  %v215_v4 = vstv %s498_s30  ;;  %s330_s0 = sld [smem:[#allocation7 + $0x18]] }
  0x50   :  { %s331_s3 = sld [smem:[#allocation7 + $0x19]]  ;;  %v204_v8 = vrot.slane %v202_v62, 4  ;;  %v216_v9 = vmul.f32 %v215_v4, %v472_v0  ;;  %v167_v10 = vadd.f32 %v165_v56, %v160_v60  ;;  %v169_v12 = vstv %s500_s6 }
  0x51   :  { %v192_v7 = vadd.f32 %v190_v61, %v185_v1  ;;  %s332_s10 = sld [smem:[#allocation7 + $0x1a]]  ;;  %v211_v14 = vrot.slane %v209_v3, 5  ;;  %v222_v32 = vstv %s504_s7  ;;  %v122_v48 = vmul.f32 %v121_v37, %v119_v36 }
  0x52   :  { %v230_v11 = vstv %s507_s8  ;;  %s516_s11 = sld [smem:[#allocation7 + $0x1b]]  ;;  %v218_v21 = vrot.slane %v216_v9, 6  ;;  %v170_v24 = vadd.f32 %v169_v12, %v167_v10  ;;  %v283_v63 = vstv %s545_s4 }
  0x53   :  { %s519_s12 = sld [smem:[#allocation10 + $0x1]]  ;;  %v199_v13 = vadd.f32 %v197_v2, %v192_v7  ;;  %v233_v15 = vstv %s328_s1  ;;  %v231_v17 = vmul.f32 %v230_v11, %v472_v0 }
  0x54   :  { %v234_v18 = vmul.f32 %v233_v15, %v472_v0  ;;  %v240_v19 = vstv %s329_s9  ;;  %s525_s13 = sld [smem:[#allocation10 + $0x2]]  ;;  %v171_v40 = vmax.f32 %v170_v24, 0.0 }
  0x55   :  { %v206_v20 = vadd.f32 %v204_v8, %v199_v13  ;;  %v241_v22 = vmul.f32 %v240_v19, %v472_v0  ;;  %v247_v23 = vstv %s330_s0  ;;  %s334_s14 = sld [smem:[#allocation8 + $0x3]] }
  0x56   :  { %v236_v25 = vrot.slane %v234_v18, 1  ;;  %v248_v26 = vmul.f32 %v247_v23, %v472_v0  ;;  %v254_v27 = vstv %s331_s3  ;;  %s335_s15 = sld [smem:[#allocation10 + $0x3]] }
  0x57   :  { %v213_v28 = vadd.f32 %v211_v14, %v206_v20  ;;  %v243_v29 = vrot.slane %v241_v22, 2  ;;  %v255_v30 = vmul.f32 %v254_v27, %v472_v0  ;;  %v261_v31 = vstv %s332_s10 }
  0x58   :  { %v238_v33 = vadd.f32 %v236_v25, %v231_v17  ;;  %v250_v34 = vrot.slane %v248_v26, 3  ;;  %v262_v35 = vmul.f32 %v261_v31, %v472_v0  ;;  %v268_v39 = vstv %s516_s11 }
  0x59   :  { %v220_v38 = vadd.f32 %v218_v21, %v213_v28  ;;  %v257_v42 = vrot.slane %v255_v30, 4  ;;  %v269_v43 = vmul.f32 %v268_v39, %v472_v0  ;;  %v173_v44 = vstv %s519_s12 }
  0x5a   :  { %v245_v41 = vadd.f32 %v243_v29, %v238_v33  ;;  %v264_v47 = vrot.slane %v262_v35, 5  ;;  %v174_v49 = vmul.f32 %v173_v44, %v171_v40  ;;  %v226_v53 = vstv %s525_s13 }
  0x5b   :  { %v223_v45 = vadd.f32 %v222_v32, %v220_v38  ;;  %v271_v52 = vrot.slane %v269_v43, 6  ;;  %v275_v55 = vstv %s334_s14 }
  0x5c   :  { %v252_v46 = vadd.f32 %v250_v34, %v245_v41  ;;  %v175_v56 = vadd.f32 %v174_v49, %v122_v48  ;;  %v279_v60 = vstv %s335_s15 }
  0x5d   :  { %v224_v50 = vmax.f32 %v223_v45, 0.0 }
  0x5e   :  { %v259_v51 = vadd.f32 %v257_v42, %v252_v46 }
  0x5f   :  { %v227_v57 = vmul.f32 %v226_v53, %v224_v50 }
  0x60   :  { %v266_v54 = vadd.f32 %v264_v47, %v259_v51 }
  0x61   :  { %v228_v61 = vadd.f32 %v227_v57, %v175_v56 }
  0x62   :  { %v273_v58 = vadd.f32 %v271_v52, %v266_v54 }
  0x64   :  { %v276_v59 = vadd.f32 %v275_v55, %v273_v58 }
  0x66   :  { %v277_v0 = vmax.f32 %v276_v59, 0.0 }
  0x68   :  { %v280_v62 = vmul.f32 %v279_v60, %v277_v0 }
  0x6a   :  { %v281_v1 = vadd.f32 %v280_v62, %v228_v61 }
  0x6c   :  { %v284_v2 = vadd.f32 %v283_v63, %v281_v1 }
  0x6e   :  { %285 = vst [vmem:[#allocation11] sm:$0x1] %v284_v2 }
  0x6f   :  { %408 = shalt.err (!%p405_p10)
}
  0x70   :  { %295 = dma.vmem_to_hbm [thread:$0]  %s293_s19, 16, %s546_s5, [#allocation5]  }
  0x71   :  { %423 = dma.done.wait [#allocation5], 16  }
  0x72   :  { %424 = vsyncadd [#allocation5], 4294967280 }
  0x73   :  { %299 = vsyncpa [#allocation4], 1 }
  0x74   :  { %300 = vsyncpa [#allocation5], 1 }
  0x75   :  { %301 = vsyncpa [#allocation6], 1 }
  0x76   :  { %302 = vsyncpa [#allocation9], 1 }

</bundles_post_ra>
